<compile_context>
chip_gen: v7x
topology: tpu7x:2x2x1
jax: 0.10.0
libtpu: 0.0.40
codegen_flags: <defaults>
</compile_context>

<pallas_src>
import functools
import math

import jax
import jax.numpy as jnp
from jax.experimental import pallas as pl
from jax.experimental.pallas import tpu as pltpu


_VMEM_LIMIT = 48 * 1024 * 1024  # safe on v5e/v6e (128 MiB) and v7x (64 MiB)


def _pick_tile(dim, max_tile):
    """Largest power-of-two tile (>=128) dividing dim, capped at max_tile;
    falls back to the full extent (always legal as a block shape)."""
    if dim <= max_tile:
        return dim
    t = max_tile
    while t >= 128:
        if dim % t == 0:
            return t
        t //= 2
    return dim  # TODO(synk): pad unaligned dims (e.g. vocab=50257) instead.


# ---------------------------------------------------------------------------
# Tiled matmul kernel (optional bias / fused residual add), K-tiled.
# ---------------------------------------------------------------------------

def _make_matmul_kernel(has_bias, has_res):
    def kern(*refs):
        idx = 0
        x_ref = refs[idx]; idx += 1
        w_ref = refs[idx]; idx += 1
        b_ref = None
        r_ref = None
        if has_bias:
            b_ref = refs[idx]; idx += 1
        if has_res:
            r_ref = refs[idx]; idx += 1
        o_ref = refs[idx]
        acc_ref = refs[idx + 1]

        k = pl.program_id(2)

        @pl.when(k == 0)
        def _():
            acc_ref[...] = jnp.zeros_like(acc_ref)

        acc_ref[...] += jnp.dot(
            x_ref[...].astype(jnp.bfloat16),
            w_ref[...],
            preferred_element_type=jnp.float32,
        )

        @pl.when(k == pl.num_programs(2) - 1)
        def _():
            h = acc_ref[...]
            if has_bias:
                h = h + b_ref[...]
            if has_res:
                h = h + r_ref[...]
            o_ref[...] = h.astype(o_ref.dtype)

    return kern


def pallas_matmul(x, w, b=None, residual=None):
    """out = x @ w (+ b) (+ residual).  x: [M,K] f32, w: [K,N] bf16."""
    M, K = x.shape
    N = w.shape[1]
    tm = _pick_tile(M, 256)
    tn = _pick_tile(N, 256)
    tk = _pick_tile(K, 512)
    has_bias = b is not None
    has_res = residual is not None

    in_specs = [
        pl.BlockSpec((tm, tk), lambda i, j, k: (i, k)),
        pl.BlockSpec((tk, tn), lambda i, j, k: (k, j)),
    ]
    args = [x, w]
    if has_bias:
        in_specs.append(pl.BlockSpec((1, tn), lambda i, j, k: (0, j)))
        args.append(b.reshape(1, N))
    if has_res:
        in_specs.append(pl.BlockSpec((tm, tn), lambda i, j, k: (i, j)))
        args.append(residual)

    cost = pl.CostEstimate(
        flops=2 * M * N * K,
        transcendentals=0,
        bytes_accessed=4 * M * K + 2 * K * N + 4 * M * N,
    )
    return pl.pallas_call(
        _make_matmul_kernel(has_bias, has_res),
        out_shape=jax.ShapeDtypeStruct((M, N), jnp.float32),
        grid=(M // tm, N // tn, K // tk),
        in_specs=in_specs,
        out_specs=pl.BlockSpec((tm, tn), lambda i, j, k: (i, j)),
        scratch_shapes=[pltpu.VMEM((tm, tn), jnp.float32)],
        compiler_params=pltpu.CompilerParams(
            dimension_semantics=("parallel", "parallel", "arbitrary"),
            vmem_limit_bytes=_VMEM_LIMIT,
        ),
        cost_estimate=cost,
    )(*args)


# ---------------------------------------------------------------------------
# Fused LayerNorm + linear (+ optional tanh-GELU).  K (=C) kept untiled so the
# full row is available for the LN statistics; C fits VMEM comfortably.
# ---------------------------------------------------------------------------

def _make_ln_linear_kernel(has_bias, activation):
    def kern(x_ref, g_ref, bln_ref, w_ref, *rest):
        if has_bias:
            b_ref, o_ref = rest
        else:
            (o_ref,) = rest

        # LayerNorm in f32 (biased variance, eps=1e-5), matches nn.LayerNorm.
        x = x_ref[...]
        mean = jnp.mean(x, axis=-1, keepdims=True)
        xc = x - mean
        var = jnp.mean(xc * xc, axis=-1, keepdims=True)
        xn = xc * jax.lax.rsqrt(var + 1e-5) * g_ref[...] + bln_ref[...]

        h = jnp.dot(
            xn.astype(jnp.bfloat16),
            w_ref[...],
            preferred_element_type=jnp.float32,
        )
        if has_bias:
            h = h + b_ref[...]
        if activation == "gelu":  # nn.GELU(approximate='tanh'), f32 math
            c = math.sqrt(2.0 / math.pi)
            h = 0.5 * h * (1.0 + jnp.tanh(c * (h + 0.044715 * h * h * h)))
        o_ref[...] = h.astype(o_ref.dtype)

    return kern


def pallas_ln_linear(x, gamma, beta, w, b=None, activation=None):
    """out = act(LayerNorm(x) @ w (+ b)).  x: [M,K] f32, w: [K,N] bf16."""
    M, K = x.shape
    N = w.shape[1]
    tm = _pick_tile(M, 256)
    tn = _pick_tile(N, 256)
    has_bias = b is not None

    in_specs = [
        pl.BlockSpec((tm, K), lambda i, j: (i, 0)),
        pl.BlockSpec((1, K), lambda i, j: (0, 0)),
        pl.BlockSpec((1, K), lambda i, j: (0, 0)),
        pl.BlockSpec((K, tn), lambda i, j: (0, j)),
    ]
    args = [x, gamma.reshape(1, K), beta.reshape(1, K), w]
    if has_bias:
        in_specs.append(pl.BlockSpec((1, tn), lambda i, j: (0, j)))
        args.append(b.reshape(1, N))

    cost = pl.CostEstimate(
        flops=2 * M * N * K,
        transcendentals=M * N if activation == "gelu" else 0,
        bytes_accessed=4 * M * K + 2 * K * N + 4 * M * N,
    )
    return pl.pallas_call(
        _make_ln_linear_kernel(has_bias, activation),
        out_shape=jax.ShapeDtypeStruct((M, N), jnp.float32),
        grid=(M // tm, N // tn),
        in_specs=in_specs,
        out_specs=pl.BlockSpec((tm, tn), lambda i, j: (i, j)),
        compiler_params=pltpu.CompilerParams(
            dimension_semantics=("parallel", "parallel"),
            vmem_limit_bytes=_VMEM_LIMIT,
        ),
        cost_estimate=cost,
    )(*args)


# ---------------------------------------------------------------------------
# Flash-style causal attention: online softmax, masked-block skipping.
# ---------------------------------------------------------------------------

def _flash_attn_kernel(q_ref, k_ref, v_ref, o_ref, m_ref, l_ref, acc_ref,
                       *, scale, tq, tkv):
    qi = pl.program_id(1)
    ki = pl.program_id(2)

    @pl.when(ki == 0)
    def _():
        m_ref[...] = jnp.full((tq, 1), -1e30, jnp.float32)
        l_ref[...] = jnp.zeros_like(l_ref)
        acc_ref[...] = jnp.zeros_like(acc_ref)

    q_start = qi * tq
    k_start = ki * tkv

    # Skip KV blocks that are entirely above the causal diagonal.
    @pl.when(k_start <= q_start + tq - 1)
    def _():
        q = (q_ref[0] * scale).astype(jnp.bfloat16)          # [tq, hd]
        k = k_ref[0].astype(jnp.bfloat16)                    # [tkv, hd]
        # q @ k^T without an explicit transpose (contract last dims).
        s = jax.lax.dot_general(
            q, k, (((1,), (1,)), ((), ())),
            preferred_element_type=jnp.float32)              # [tq, tkv] f32

        row = jax.lax.broadcasted_iota(jnp.int32, (tq, tkv), 0) + q_start
        col = jax.lax.broadcasted_iota(jnp.int32, (tq, tkv), 1) + k_start
        s = jnp.where(col <= row, s, -1e30)                  # mask stays f32

        m_prev = m_ref[...]
        m_new = jnp.maximum(m_prev, jnp.max(s, axis=-1, keepdims=True))
        alpha = jnp.exp(m_prev - m_new)
        p = jnp.exp(s - m_new)
        l_ref[...] = alpha * l_ref[...] + jnp.sum(p, axis=-1, keepdims=True)
        acc_ref[...] = alpha * acc_ref[...] + jax.lax.dot_general(
            p.astype(jnp.bfloat16), v_ref[0].astype(jnp.bfloat16),
            (((1,), (0,)), ((), ())),
            preferred_element_type=jnp.float32)
        m_ref[...] = m_new

    @pl.when(ki == pl.num_programs(2) - 1)
    def _():
        inv_l = pl.reciprocal(l_ref[...], approx=True)
        o_ref[0] = (acc_ref[...] * inv_l).astype(o_ref.dtype)


def pallas_flash_attention(q, k, v):
    """Causal attention.  q, k, v: [B*H, T, hd] f32 -> [B*H, T, hd] f32."""
    BH, T, hd = q.shape
    scale = 1.0 / math.sqrt(hd)
    tq = _pick_tile(T, 128)
    tkv = _pick_tile(T, 128)

    kern = functools.partial(_flash_attn_kernel, scale=scale, tq=tq, tkv=tkv)
    q_spec = pl.BlockSpec((1, tq, hd), lambda bh, qi, ki: (bh, qi, 0))
    kv_spec = pl.BlockSpec((1, tkv, hd), lambda bh, qi, ki: (bh, ki, 0))
    return pl.pallas_call(
        kern,
        out_shape=jax.ShapeDtypeStruct((BH, T, hd), jnp.float32),
        grid=(BH, T // tq, T // tkv),
        in_specs=[q_spec, kv_spec, kv_spec],
        out_specs=q_spec,
        scratch_shapes=[
            pltpu.VMEM((tq, 1), jnp.float32),   # running max m
            pltpu.VMEM((tq, 1), jnp.float32),   # running sum l
            pltpu.VMEM((tq, hd), jnp.float32),  # output accumulator
        ],
        compiler_params=pltpu.CompilerParams(
            dimension_semantics=("parallel", "parallel", "arbitrary"),
            vmem_limit_bytes=_VMEM_LIMIT,
        ),
    )(q, k, v)


# ---------------------------------------------------------------------------
# GPT forward (glue in plain JAX, compute in Pallas kernels)
# ---------------------------------------------------------------------------

def attn_sublayer(x, p, n_head):
    """Returns x + attn(ln1(x)) — residual fused into the projection matmul."""
    B, T, C = x.shape
    hd = C // n_head
    x_flat = x.reshape(B * T, C)
    # Fused LN1 + qkv projection.
    qkv = pallas_ln_linear(x_flat, p["ln1_g"], p["ln1_b"],
                           p["attn_w"], p["attn_b"])             # [B*T, 3C]
    qkv = qkv.reshape(B, T, 3, n_head, hd)
    # TODO(synk): head split/merge still goes through JAX transposes (HBM
    # copies); a fully lane-dense all-heads-per-block kernel would avoid them.
    q = qkv[:, :, 0].transpose(0, 2, 1, 3).reshape(B * n_head, T, hd)
    k = qkv[:, :, 1].transpose(0, 2, 1, 3).reshape(B * n_head, T, hd)
    v = qkv[:, :, 2].transpose(0, 2, 1, 3).reshape(B * n_head, T, hd)
    y = pallas_flash_attention(q, k, v)                          # [B*H, T, hd]
    y = y.reshape(B, n_head, T, hd).transpose(0, 2, 1, 3).reshape(B * T, C)
    out = pallas_matmul(y, p["attn_proj_w"], p["attn_proj_b"], residual=x_flat)
    return out.reshape(B, T, C)


def mlp_sublayer(x, p):
    """Returns x + mlp(ln2(x)) — residual fused into the projection matmul."""
    B, T, C = x.shape
    x_flat = x.reshape(B * T, C)
    h = pallas_ln_linear(x_flat, p["ln2_g"], p["ln2_b"],
                         p["fc_w"], p["fc_b"], activation="gelu")  # [B*T, 4C]
    out = pallas_matmul(h, p["mlp_proj_w"], p["mlp_proj_b"], residual=x_flat)
    return out.reshape(B, T, C)


def gpt_forward(params, idx, n_head):
    B, T = idx.shape
    # Embedding lookups are gathers -> plain JAX glue.
    tok_emb = jnp.take(params["wte"], idx, axis=0)     # [B, T, C]
    pos_emb = params["wpe"][:T]                        # [T, C]
    x = tok_emb + pos_emb[None, :, :]
    C = x.shape[-1]
    for blk in params["h"]:
        x = attn_sublayer(x, blk, n_head)
        x = mlp_sublayer(x, blk)
    x_flat = x.reshape(B * T, C)
    # Fused ln_f + lm_head (tied, pre-transposed bf16 copy made once at init).
    logits = pallas_ln_linear(x_flat, params["lnf_g"], params["lnf_b"],
                              params["lm_head_w"])
    return logits.reshape(B, T, -1)
    # TODO(synk): cross-entropy loss branch (targets is None here) not implemented.


# ---------------------------------------------------------------------------
# Deterministic parameter construction (matches __init__ shapes & init stds).
# Matmul weights stored [in, out] in bf16; LN params / biases / embeddings f32.
# ---------------------------------------------------------------------------

def init_params(key, vocab_size, block_size, n_layer, n_embd):
    std = 0.02
    proj_std = 0.02 * (2 * n_layer) ** -0.5
    keys = iter(jax.random.split(key, 2 + 4 * n_layer))

    def nrm(shape, s, dtype):
        return (s * jax.random.normal(next(keys), shape, dtype=jnp.float32)).astype(dtype)

    wte = nrm((vocab_size, n_embd), std, jnp.float32)
    params = {
        "wte": wte,                                        # [V, C] f32 (lookup)
        "wpe": nrm((block_size, n_embd), std, jnp.float32),
        "lm_head_w": wte.T.astype(jnp.bfloat16),           # tied, transposed once
        "lnf_g": jnp.ones((n_embd,), jnp.float32),
        "lnf_b": jnp.zeros((n_embd,), jnp.float32),
        "h": [],
    }
    for _ in range(n_layer):
        blk = {
            "ln1_g": jnp.ones((n_embd,), jnp.float32),
            "ln1_b": jnp.zeros((n_embd,), jnp.float32),
            "attn_w": nrm((n_embd, 3 * n_embd), std, jnp.bfloat16),
            "attn_b": jnp.zeros((3 * n_embd,), jnp.float32),
            "attn_proj_w": nrm((n_embd, n_embd), proj_std, jnp.bfloat16),
            "attn_proj_b": jnp.zeros((n_embd,), jnp.float32),
            "ln2_g": jnp.ones((n_embd,), jnp.float32),
            "ln2_b": jnp.zeros((n_embd,), jnp.float32),
            "fc_w": nrm((n_embd, 4 * n_embd), std, jnp.bfloat16),
            "fc_b": jnp.zeros((4 * n_embd,), jnp.float32),
            "mlp_proj_w": nrm((4 * n_embd, n_embd), proj_std, jnp.bfloat16),
            "mlp_proj_b": jnp.zeros((n_embd,), jnp.float32),
        }
        params["h"].append(blk)
    return params


if __name__ == "__main__":
    # Small GPT config: vocab=64, block_size=16, n_layer=2, n_head=4, n_embd=32
    vocab_size, block_size, n_layer, n_head, n_embd = 64, 16, 2, 4, 32
    B, T = 2, 8

    key = jax.random.PRNGKey(0)
    pkey, ikey = jax.random.split(key)
    params = init_params(pkey, vocab_size, block_size, n_layer, n_embd)
    idx = jax.random.randint(ikey, (B, T), 0, vocab_size, dtype=jnp.int32)

    logits = gpt_forward(params, idx, n_head)
    logits = jax.block_until_ready(logits)
    assert logits.shape == (B, T, vocab_size)
    assert bool(jnp.all(jnp.isfinite(logits)))
    print("KERNEL_OK")
</pallas_src>

<mosaic_0001>
module attributes {stable_mosaic.version = 11 : i64} {
  func.func @kern(%arg0: i32, %arg1: i32, %arg2: memref<16x32xf32, #tpu.memory_space<vmem>>, %arg3: memref<1x32xf32, #tpu.memory_space<vmem>>, %arg4: memref<1x32xf32, #tpu.memory_space<vmem>>, %arg5: memref<32x96xbf16, #tpu.memory_space<vmem>>, %arg6: memref<1x96xf32, #tpu.memory_space<vmem>>, %arg7: memref<16x96xf32, #tpu.memory_space<vmem>>) attributes {dimension_semantics = [#tpu.dimension_semantics<parallel>, #tpu.dimension_semantics<parallel>], iteration_bounds = array<i64: 1, 1>, scalar_prefetch = 0 : i64, scratch_operands = 0 : i64, tpu.core_type = #tpu.core_type<tc>, window_params = [{transform_indices = @transform_0, window_bounds = array<i64: 16, 32>}, {pipeline_mode = #tpu.pipeline_mode<synchronous>, transform_indices = @transform_1, window_bounds = array<i64: 1, 32>}, {pipeline_mode = #tpu.pipeline_mode<synchronous>, transform_indices = @transform_2, window_bounds = array<i64: 1, 32>}, {transform_indices = @transform_3, window_bounds = array<i64: 32, 96>}, {transform_indices = @transform_4, window_bounds = array<i64: 1, 96>}, {transform_indices = @transform_5, window_bounds = array<i64: 16, 96>}]} {
    %c0 = arith.constant 0 : index
    %c0_0 = arith.constant 0 : index
    %0 = vector.load %arg2[%c0, %c0_0] : memref<16x32xf32, #tpu.memory_space<vmem>>, vector<16x32xf32>
    %cst = arith.constant dense<0.000000e+00> : vector<16xf32>
    %1 = vector.multi_reduction <add>, %0, %cst [1] : vector<16x32xf32> to vector<16xf32>
    %2 = vector.shape_cast %1 : vector<16xf32> to vector<16x1xf32>
    %cst_1 = arith.constant 3.200000e+01 : f32
    %3 = vector.broadcast %cst_1 : f32 to vector<16x1xf32>
    %4 = arith.divf %2, %3 : vector<16x1xf32>
    %5 = vector.broadcast %4 : vector<16x1xf32> to vector<16x32xf32>
    %6 = arith.subf %0, %5 : vector<16x32xf32>
    %7 = arith.mulf %6, %6 : vector<16x32xf32>
    %cst_2 = arith.constant dense<0.000000e+00> : vector<16xf32>
    %8 = vector.multi_reduction <add>, %7, %cst_2 [1] : vector<16x32xf32> to vector<16xf32>
    %9 = vector.shape_cast %8 : vector<16xf32> to vector<16x1xf32>
    %cst_3 = arith.constant 3.200000e+01 : f32
    %10 = vector.broadcast %cst_3 : f32 to vector<16x1xf32>
    %11 = arith.divf %9, %10 : vector<16x1xf32>
    %cst_4 = arith.constant 9.99999974E-6 : f32
    %12 = vector.broadcast %cst_4 : f32 to vector<16x1xf32>
    %13 = arith.addf %11, %12 : vector<16x1xf32>
    %14 = math.rsqrt %13 : vector<16x1xf32>
    %15 = vector.broadcast %14 : vector<16x1xf32> to vector<16x32xf32>
    %16 = arith.mulf %6, %15 : vector<16x32xf32>
    %c0_5 = arith.constant 0 : index
    %c0_6 = arith.constant 0 : index
    %17 = vector.load %arg3[%c0_5, %c0_6] : memref<1x32xf32, #tpu.memory_space<vmem>>, vector<1x32xf32>
    %18 = vector.broadcast %17 : vector<1x32xf32> to vector<16x32xf32>
    %19 = arith.mulf %16, %18 : vector<16x32xf32>
    %c0_7 = arith.constant 0 : index
    %c0_8 = arith.constant 0 : index
    %20 = vector.load %arg4[%c0_7, %c0_8] : memref<1x32xf32, #tpu.memory_space<vmem>>, vector<1x32xf32>
    %21 = vector.broadcast %20 : vector<1x32xf32> to vector<16x32xf32>
    %22 = arith.addf %19, %21 : vector<16x32xf32>
    %23 = arith.truncf %22 : vector<16x32xf32> to vector<16x32xbf16>
    %c0_9 = arith.constant 0 : index
    %c0_10 = arith.constant 0 : index
    %24 = vector.load %arg5[%c0_9, %c0_10] : memref<32x96xbf16, #tpu.memory_space<vmem>>, vector<32x96xbf16>
    %cst_11 = arith.constant dense<0.000000e+00> : vector<16x96xf32>
    %25 = tpu.matmul %23, %24, %cst_11 {dimension_numbers = #tpu.dot_dimension_numbers<[1], [0], [0], [1], [0, 0, 1, 1], [], []>} : vector<16x32xbf16>, vector<32x96xbf16>, vector<16x96xf32> -> vector<16x96xf32>
    %c0_12 = arith.constant 0 : index
    %c0_13 = arith.constant 0 : index
    %26 = vector.load %arg6[%c0_12, %c0_13] : memref<1x96xf32, #tpu.memory_space<vmem>>, vector<1x96xf32>
    %27 = vector.broadcast %26 : vector<1x96xf32> to vector<16x96xf32>
    %28 = arith.addf %25, %27 : vector<16x96xf32>
    %c0_14 = arith.constant 0 : index
    %c0_15 = arith.constant 0 : index
    %29 = vector.load %arg7[%c0_14, %c0_15] : memref<16x96xf32, #tpu.memory_space<vmem>>, vector<16x96xf32>
    tpu.vector_store %arg7[%c0_14, %c0_15], %28 {strides = array<i32>} : memref<16x96xf32, #tpu.memory_space<vmem>>, vector<16x96xf32>,
    return
  }
  func.func @transform_0(%arg0: i32, %arg1: i32) -> (i32, i32) {
    %c0_i32 = arith.constant 0 : i32
    %c0_i32_0 = arith.constant 0 : i32
    return %arg0, %c0_i32 : i32, i32
  }
  func.func @transform_1(%arg0: i32, %arg1: i32) -> (i32, i32) {
    %c0_i32 = arith.constant 0 : i32
    %c0_i32_0 = arith.constant 0 : i32
    %c0_i32_1 = arith.constant 0 : i32
    return %c0_i32, %c0_i32_0 : i32, i32
  }
  func.func @transform_2(%arg0: i32, %arg1: i32) -> (i32, i32) {
    %c0_i32 = arith.constant 0 : i32
    %c0_i32_0 = arith.constant 0 : i32
    %c0_i32_1 = arith.constant 0 : i32
    return %c0_i32, %c0_i32_0 : i32, i32
  }
  func.func @transform_3(%arg0: i32, %arg1: i32) -> (i32, i32) {
    %c0_i32 = arith.constant 0 : i32
    %c0_i32_0 = arith.constant 0 : i32
    return %c0_i32, %arg1 : i32, i32
  }
  func.func @transform_4(%arg0: i32, %arg1: i32) -> (i32, i32) {
    %c0_i32 = arith.constant 0 : i32
    %c0_i32_0 = arith.constant 0 : i32
    return %c0_i32, %arg1 : i32, i32
  }
  func.func @transform_5(%arg0: i32, %arg1: i32) -> (i32, i32) {
    %c0_i32 = arith.constant 0 : i32
    return %arg0, %arg1 : i32, i32
  }
}

</mosaic_0001>

<bundles_post_ra>
// kernel: tpu_custom_call.1
= control target key start
LH: loop header
LB: loop body
LE: loop exit
PB: predicated region body
PF: predicated region fallthrough
CT: control target
= control target key end

     0   :  { %10 = vsyncpa [#allocation3], 0  ;;  %s386_s0 = inlined_call_operand.hbm [shape: f32[16,32], index: 0, kind: input, shape index: {}]   ;;  %s387_s1 = inlined_call_operand.vmem [shape: f32[1,32], index: 1, kind: input, shape index: {}]   ;;  %s388_s2 = inlined_call_operand.vmem [shape: f32[1,32], index: 2, kind: input, shape index: {}]   ;;  %s389_s3 = inlined_call_operand.hbm [shape: bf16[32,96], index: 3, kind: input, shape index: {}]   ;;  %s390_s4 = inlined_call_operand.vmem [shape: f32[1,96], index: 4, kind: input, shape index: {}]   ;;  %s391_s5 = inlined_call_operand.hbm [shape: f32[16,96], index: 5, kind: output, shape index: {}]  }
   0x1   :  { %11 = vsyncpa [#allocation6], 0 }
   0x2   :  { %12 = vsyncpa [#allocation4], 0  ;;  %s291_s18 = smov [#allocation2]   ;;  %s219_s22 = scalar_lea.hbm %s386_s0, 256 }
   0x3   :  { %s18_s19 = sshll.u32 %s291_s18, 4  ;;  %p220_p0 = scmp.ne.s32.totalorder %s386_s0, %s219_s22  ;;  %s19_s19 = int_to_ptr.vmem [resolvable:$true] %s18_s19 }
   0x4   :  { %p223_p1 = scmp.lt.u32.totalorder %s219_s22, %s386_s0 }
   0x6   :  { %p225_p2 = pnand %p223_p1, %p220_p0 }
   0x8   :  { %228 = shalt.err (!%p225_p2)
}
   0x9   :  { %s229_s27 = scalar_lea.vmem %s19_s19, 256  ;;  %p234_p4 = scmp.lt.s32.totalorder %s19_s19, %s19_s19 }
   0xa   :  { %p230_p3 = scmp.ne.s32.totalorder %s19_s19, %s229_s27  ;;  %p235_p5 = scmp.lt.s32.totalorder %s229_s27, %s229_s27 }
   0xc   :  { %p236_p6 = por %p235_p5, %p234_p4 }
   0xe   :  { %p237_p7 = pnand %p236_p6, %p230_p3 }
  0x10   :  { %240 = shalt.err (!%p237_p7)
}
  0x11   :  { %s292_s28 = smov 128   ;;  %s293_s29 = smov 8  }
  0x12   :  { %24 = dma.hbm_to_vmem [thread:$0]  %s386_s0, 256, %s19_s19, [#allocation3], %s292_s28, %s292_s28, %s293_s29  }
  0x13   :  { %s294_s7 = smov [#allocation5]   ;;  %s241_s11 = scalar_lea.hbm %s389_s3, 256 }
  0x14   :  { %s34_s8 = sshll.u32 %s294_s7, 4  ;;  %p242_p8 = scmp.ne.s32.totalorder %s389_s3, %s241_s11  ;;  %s35_s8 = int_to_ptr.vmem [resolvable:$true] %s34_s8 }
  0x15   :  { %p245_p9 = scmp.lt.u32.totalorder %s241_s11, %s389_s3 }
  0x17   :  { %p247_p10 = pnand %p245_p9, %p242_p8 }
  0x19   :  { %250 = shalt.err (!%p247_p10)
}
  0x1a   :  { %s251_s16 = scalar_lea.vmem %s35_s8, 256  ;;  %p256_p12 = scmp.lt.s32.totalorder %s35_s8, %s35_s8 }
  0x1b   :  { %p252_p11 = scmp.ne.s32.totalorder %s35_s8, %s251_s16  ;;  %p257_p13 = scmp.lt.s32.totalorder %s251_s16, %s251_s16 }
  0x1d   :  { %p258_p0 = por %p257_p13, %p256_p12 }
  0x1f   :  { %p259_p1 = pnand %p258_p0, %p252_p11 }
  0x21   :  { %262 = shalt.err (!%p259_p1)
}
  0x22   :  { %s295_s0 = smov 64   ;;  %s296_s17 = smov 4  }
  0x23   :  { %40 = dma.hbm_to_vmem [thread:$0]  %s389_s3, 256, %s35_s8, [#allocation6], %s295_s0, %s295_s0, %s296_s17  }
  0x24   :  { %285 = dma.done.wait [#allocation3], 256  }
  0x25   :  { %286 = vsyncadd [#allocation3], 4294967040 }
  0x26   :  { %287 = dma.done.wait [#allocation6], 256  }
  0x27   :  { %288 = vsyncadd [#allocation6], 4294967040  ;;  %vm52_vm0 = vcmask 261120   ;;  %v50_v0 = vld [vmem:[#allocation2] sm:$0xff]  ;;  %v51_v1 = vld [vmem:[#allocation2 + $0x8] sm:$0xff]  ;;  %v297_v15 = vmov 0.0  }
  0x28   :  { %v53_v2 = vsel %vm52_vm0, %v50_v0, 0.0  ;;  %v56_v3 = vsel %vm52_vm0, %v51_v1, 0.0  ;;  %v213_v14 = vld [vmem:[#allocation5] sm:$0xff]   ;;  %196 = vmatprep.subr.bf16.mxu0 %v297_v15  ;;  %v214_v16 = vld [vmem:[#allocation5 + $0x8] sm:$0xff]   ;;  %vm298_vm1 = vmmov 0   ;;  %vm166_vm2 = vcmask 785408  }
  0x29   :  { %54 = vadd.xlane.f32.xlu0 %v53_v2  ;;  %197 = vmatpush3.bf16.msra.mxu0 %v213_v14  ;;  %v187_v25 = vld [vmem:[%s387_s1] ss:$0 sm:$0xff]  ;;  %s299_s1 = smov [#allocation7]  }
  0x2a   :  { %200 = vmatprep.mubr.msk.bf16.mxu0 %vm298_vm1, %v297_v15  ;;  %198 = vmatprep.subr.bf16.mxu0 %v297_v15  ;;  %v188_v29 = vld [vmem:[%s388_s2] ss:$0 sm:$0xff]  ;;  %s174_s25 = sshll.u32 %s299_s1, 4  ;;  %s175_s25 = int_to_ptr.vmem [resolvable:$true] %s174_s25 }
  0x2b   :  { %v189_v34 = vld [vmem:[%s390_s4] ss:$0 sm:$0xff]  ;;  %s263_s2 = scalar_lea.vmem %s175_s25, 256  ;;  %p268_p3 = scmp.lt.s32.totalorder %s175_s25, %s175_s25 }
  0x2c   :  { %p264_p2 = scmp.ne.s32.totalorder %s175_s25, %s263_s2  ;;  %p269_p4 = scmp.lt.s32.totalorder %s263_s2, %s263_s2 }
  0x2d   :  { %57 = vadd.xlane.f32.xlu0 %v56_v3  ;;  %199 = vmatpush3.bf16.msra.mxu0 %v214_v16 }
  0x2e   :  { %p270_p5 = por %p269_p4, %p268_p3 }
  0x30   :  { %p271_p6 = pnand %p270_p5, %p264_p2 }
  0xb6   :  { %v55_v4 = vpop.xlane.xlu0 %54 }
  0xb7   :  { %v60_v5 = vmul.f32 0.03125, %v55_v4 }
  0xb9   :  { %v62_v6 = vsub.f32 %v50_v0, %v60_v5 }
  0xba   :  { %v58_v7 = vpop.xlane.xlu0 %57 }
  0xbb   :  { %v61_v8 = vmul.f32 0.03125, %v58_v7  ;;  %v64_v9 = vmul.f32 %v62_v6, %v62_v6 }
  0xbd   :  { %v63_v10 = vsub.f32 %v51_v1, %v61_v8  ;;  %v66_v11 = vsel %vm52_vm0, %v64_v9, 0.0 }
  0xbe   :  { %67 = vadd.xlane.f32.xlu1 %v66_v11 }
  0xbf   :  { %v65_v12 = vmul.f32 %v63_v10, %v63_v10 }
  0xc1   :  { %v69_v13 = vsel %vm52_vm0, %v65_v12, 0.0 }
  0xc2   :  { %70 = vadd.xlane.f32.xlu1 %v69_v13 }
 0x14b   :  { %v68_v17 = vpop.xlane.xlu1 %67 }
 0x14c   :  { %v72_v18 = vmul.f32 0.03125, %v68_v17 }
 0x14e   :  { %v74_v19 = vadd.f32 1e-05, %v72_v18 }
 0x14f   :  { %v71_v20 = vpop.xlane.xlu1 %70 }
 0x150   :  { %215 = vrsqrt.f32 %v74_v19  ;;  %v73_v21 = vmul.f32 0.03125, %v71_v20 }
 0x152   :  { %v75_v22 = vadd.f32 1e-05, %v73_v21 }
 0x154   :  { %217 = vrsqrt.f32 %v75_v22 }
 0x15a   :  { %v216_v23 = vpop.eup %215 }
 0x15b   :  { %v78_v24 = vmul.f32 %v216_v23, %v62_v6 }
 0x15d   :  { %v87_v28 = vmul.f32 %v187_v25, %v78_v24 }
 0x15e   :  { %v218_v26 = vpop.eup %217 }
 0x15f   :  { %v79_v27 = vmul.f32 %v218_v26, %v63_v10  ;;  %v96_v31 = vadd.f32 %v188_v29, %v87_v28 }
 0x161   :  { %v88_v30 = vmul.f32 %v187_v25, %v79_v27 }
 0x163   :  { %v97_v32 = vadd.f32 %v188_v29, %v88_v30 }
 0x165   :  { %v98_v33 = vpack.c.bf16 %v97_v32, %v96_v31 }
 0x167   :  { %201 = vmatmul.mubr.msk.bf16.vlgmr.msra.gmra.mrb[0].mxu0 %vm52_vm0, %v98_v33 }
 0x23a   :  { %v159_v35 = vpop.f32.mrb[0].mxu0 }
 0x23b   :  { %v160_v36 = vadd.f32 %v189_v34, %v159_v35  ;;  %v202_v37 = vpop.f32.mrb[1].mxu0 }
 0x23c   :  { %v162_v38 = vpop.f32.mrb[2].mxu0 }
 0x23d   :  { %v163_v39 = vadd.f32 %v189_v34, %v162_v38  ;;  %v203_v40 = vpop.f32.mrb[3].mxu0  ;;  %167 = vst.msk [vmem:[#allocation7] sm:$0xff] %vm166_vm2, %v160_v36 }
 0x23f   :  { %168 = vst.msk [vmem:[#allocation7 + $0x8] sm:$0xff] %vm166_vm2, %v163_v39 }
 0x240   :  { %274 = shalt.err (!%p271_p6)
}
 0x241   :  { %s275_s27 = scalar_lea.hbm %s391_s5, 256 }
 0x242   :  { %p276_p7 = scmp.ne.s32.totalorder %s391_s5, %s275_s27  ;;  %p279_p8 = scmp.lt.u32.totalorder %s275_s27, %s391_s5 }
 0x244   :  { %p281_p9 = pnand %p279_p8, %p276_p7 }
 0x246   :  { %284 = shalt.err (!%p281_p9)
}
 0x247   :  { %180 = dma.vmem_to_hbm [thread:$0]  %s175_s25, 256, %s391_s5, [#allocation4], %s292_s28, %s292_s28, %s293_s29  }
 0x248   :  { %289 = dma.done.wait [#allocation4], 256  }
 0x249   :  { %290 = vsyncadd [#allocation4], 4294967040 }
 0x24a   :  { %184 = vsyncpa [#allocation3], 1 }
 0x24b   :  { %185 = vsyncpa [#allocation6], 1 }
 0x24c   :  { %186 = vsyncpa [#allocation4], 1 }

</bundles_post_ra>
